<compile_context>
chip_gen: v7x
topology: tpu7x:2x2x1
jax: 0.10.0
libtpu: 0.0.40
codegen_flags: <defaults>
</compile_context>

<pallas_src>
import functools

import jax
import jax.numpy as jnp
from jax.experimental import pallas as pl
from jax.experimental.pallas import tpu as pltpu


def _round_up(x: int, m: int) -> int:
    return ((x + m - 1) // m) * m


def pca_transform_kernel(x_ref, comp_t_ref, mproj_ref, o_ref):
    # x_ref:      (1, tile_n, D)   current tile of samples (compute dtype)
    # comp_t_ref: (1, D, Kp)       components^T, K padded for the MXU (resident)
    # mproj_ref:  (1, 1, Ko)       mean_ @ components^T, f32 (resident)
    # o_ref:      (1, tile_n, Ko)  projected output (Ko == K when K << 128)
    ko = o_ref.shape[-1]
    acc = jnp.dot(
        x_ref[0], comp_t_ref[0], preferred_element_type=jnp.float32
    )                                                       # (tile_n, Kp) on the MXU, f32 acc
    o_ref[0] = (acc[:, :ko] - mproj_ref[0]).astype(o_ref.dtype)


def _pick_tile_n(N: int, B: int, cap_rows: int, tile_n_pref: int):
    """Pick a sublane-aligned tile that divides N (no wrapper pad) and fits VMEM."""
    cap = max(8, min(cap_rows, tile_n_pref))
    if N <= cap:
        tn, n_pad = N, N                       # single full-extent tile, no padding
    else:
        tn = 0
        t = (cap // 8) * 8
        while t >= 8:                          # largest multiple of 8 dividing N
            if N % t == 0:
                tn = t
                break
            t -= 8
        if tn:
            n_pad = N
        else:                                  # rare fallback: minimal padding
            tn = (cap // 8) * 8
            n_pad = _round_up(N, tn)
    # v7x has 2 TensorCores: make sure the grid has >= 2 blocks when possible.
    if B * (n_pad // tn) < 2:
        half = tn // 2
        if half >= 8 and half % 8 == 0 and n_pad % half == 0:
            tn = half
    return tn, n_pad


@functools.partial(jax.jit, static_argnames=("tile_n", "compute_dtype"))
def pca_transform(x, mean_, components_, *, tile_n=512, compute_dtype=jnp.bfloat16):
    """Pallas equivalent of PCA.transform(X) for 3-D X: (B, N, D) -> (B, N, K)."""
    B, N, D = x.shape
    K = components_.shape[1]
    out_dtype = x.dtype
    cdt = jnp.dtype(out_dtype if compute_dtype is None else compute_dtype)
    isz = cdt.itemsize
    osz = jnp.dtype(out_dtype).itemsize

    # --- layout plumbing (wrapper side) -------------------------------------
    # MXU RHS width: 128-multiple (256-multiple once K is large enough that the
    # bf16 kernel approaches compute-bound on the 256-wide v6e/v7x MXU).
    Kp = _round_up(max(K, 1), 256 if K >= 512 else 128)
    # Output width: skip lane padding (and the post-call slice copy) when the
    # padded width would inflate output HBM writes by >= 4x.
    Ko = K if Kp >= 4 * K else Kp

    # Pre-transpose components to (B, D, Kp); cast operands to the compute dtype.
    comp_t = jnp.swapaxes(components_, -2, -1)                      # (B, D, K)
    comp_t = jnp.pad(comp_t, ((0, 0), (0, 0), (0, Kp - K))).astype(cdt)
    x_c = x if x.dtype == cdt else x.astype(cdt)
    # Fold the mean into the matmul: mean_ @ C^T in f32 (tiny), sliced to Ko.
    mproj = jnp.matmul(mean_.astype(jnp.float32),
                       comp_t.astype(jnp.float32))[:, :, :Ko]       # (B, 1, Ko) f32

    # --- tile selection against a v7x-safe (~48 MiB) VMEM budget -------------
    budget = 48 * 1024 * 1024
    fixed = 2 * D * Kp * isz + 4 * Ko * 4           # resident comp^T (dbl-buffered) + mproj
    per_row = 2 * D * isz + 2 * Ko * osz + Kp * 4   # X tile, out tile, f32 acc
    cap_rows = max(8, (budget - fixed) // per_row)
    tn, N_pad = _pick_tile_n(N, B, cap_rows, tile_n)
    if N_pad != N:  # rare fallback only (N with no multiple-of-8 divisor <= cap)
        x_c = jnp.pad(x_c, ((0, 0), (0, N_pad - N), (0, 0)))

    grid = (B, N_pad // tn)

    vmem_est = 2 * tn * D * isz + 2 * D * Kp * isz + 2 * tn * Ko * osz + tn * Kp * 4 + 4 * Ko * 4
    vmem_limit = int(min(max(2 * vmem_est, 32 << 20), 56 << 20))

    cost = pl.CostEstimate(
        flops=2 * B * N_pad * D * Kp,
        transcendentals=0,
        bytes_accessed=(B * N_pad * D * isz        # X read (compute dtype)
                        + B * D * Kp * isz         # components^T read
                        + B * Ko * 4               # mean projection read
                        + B * N * Ko * osz),       # unpadded output write
    )

    out = pl.pallas_call(
        pca_transform_kernel,
        out_shape=jax.ShapeDtypeStruct((B, N_pad, Ko), out_dtype),
        grid_spec=pltpu.PrefetchScalarGridSpec(
            num_scalar_prefetch=0,
            grid=grid,
            in_specs=[
                # X: streamed tile-by-tile over the N axis.
                pl.BlockSpec((1, tn, D), lambda b, n: (b, n, 0)),
                # components^T: same block for every N tile -> stays resident.
                pl.BlockSpec((1, D, Kp), lambda b, n: (b, 0, 0)),
                # mean projection: tiny, resident.
                pl.BlockSpec((1, 1, Ko), lambda b, n: (b, 0, 0)),
            ],
            out_specs=pl.BlockSpec((1, tn, Ko), lambda b, n: (b, n, 0)),
        ),
        compiler_params=pltpu.CompilerParams(
            dimension_semantics=("parallel", "parallel"),
            vmem_limit_bytes=vmem_limit,
        ),
        cost_estimate=cost,
    )(x_c, comp_t, mproj)

    # Slice only if padding was actually introduced (usually a no-op).
    if N_pad != N or Ko != K:
        out = out[:, :N, :K]
    return out


if __name__ == "__main__":
    key = jax.random.PRNGKey(0)
    B, N, D, K = 2, 8, 32, 4   # batch=2, samples=8, features=32, n_components=4

    kx, km, kc = jax.random.split(key, 3)
    x = jax.random.normal(kx, (B, N, D), dtype=jnp.float32)

    # Deterministic synthetic buffers with the shapes PCA.fit would register
    # (mean_: (B,1,D), components_: (B,K,D)).
    # TODO(synk): torch.linalg.svd-based fit has no Pallas equivalent; buffers
    # are initialized deterministically in-script instead of being fit via SVD.
    mean_ = jax.random.normal(km, (B, 1, D), dtype=jnp.float32)
    components_ = jax.random.normal(kc, (B, K, D), dtype=jnp.float32)

    # Plain-JAX reference of the exact PyTorch forward semantics.
    ref = jnp.matmul(x - mean_, jnp.swapaxes(components_, -2, -1))

    # Exact-dtype path (f32 streaming): matches the reference tightly.
    y32 = jax.block_until_ready(pca_transform(x, mean_, components_, compute_dtype=None))
    assert y32.shape == (B, N, K), y32.shape
    assert jnp.allclose(y32, ref, atol=1e-4, rtol=1e-4)

    # Default bf16-streamed path (half the HBM traffic, f32 MXU accumulation).
    ybf = jax.block_until_ready(pca_transform(x, mean_, components_))
    assert ybf.shape == (B, N, K), ybf.shape
    assert jnp.allclose(ybf, ref, atol=2e-1, rtol=2e-2)

    print("KERNEL_OK")
</pallas_src>

<mosaic_0001>
module attributes {stable_mosaic.version = 11 : i64} {
  func.func @pca_transform_kernel(%arg0: i32, %arg1: i32, %arg2: memref<1x8x32xf32, #tpu.memory_space<vmem>>, %arg3: memref<1x32x128xf32, #tpu.memory_space<vmem>>, %arg4: memref<1x1x4xf32, #tpu.memory_space<vmem>>, %arg5: memref<1x8x4xf32, #tpu.memory_space<vmem>>) attributes {dimension_semantics = [#tpu.dimension_semantics<parallel>, #tpu.dimension_semantics<parallel>], iteration_bounds = array<i64: 2, 1>, scalar_prefetch = 0 : i64, scratch_operands = 0 : i64, tpu.core_type = #tpu.core_type<tc>, window_params = [{transform_indices = @transform_0, window_bounds = array<i64: 1, 8, 32>}, {transform_indices = @transform_1, window_bounds = array<i64: 1, 32, 128>}, {transform_indices = @transform_2, window_bounds = array<i64: 1, 1, 4>}, {transform_indices = @transform_3, window_bounds = array<i64: 1, 8, 4>}]} {
    %c0 = arith.constant 0 : index
    %c0_0 = arith.constant 0 : index
    %c0_1 = arith.constant 0 : index
    %0 = vector.load %arg2[%c0, %c0_0, %c0_1] : memref<1x8x32xf32, #tpu.memory_space<vmem>>, vector<1x8x32xf32>
    %1 = vector.shape_cast %0 : vector<1x8x32xf32> to vector<8x32xf32>
    %c0_2 = arith.constant 0 : index
    %c0_3 = arith.constant 0 : index
    %c0_4 = arith.constant 0 : index
    %2 = vector.load %arg3[%c0_2, %c0_3, %c0_4] : memref<1x32x128xf32, #tpu.memory_space<vmem>>, vector<1x32x128xf32>
    %3 = vector.shape_cast %2 : vector<1x32x128xf32> to vector<32x128xf32>
    %cst = arith.constant dense<0.000000e+00> : vector<8x128xf32>
    %4 = tpu.matmul %1, %3, %cst {dimension_numbers = #tpu.dot_dimension_numbers<[1], [0], [0], [1], [0, 0, 1, 1], [], []>} : vector<8x32xf32>, vector<32x128xf32>, vector<8x128xf32> -> vector<8x128xf32>
    %5 = vector.extract_strided_slice %4 {offsets = [0, 0], sizes = [8, 4], strides = [1, 1]} : vector<8x128xf32> to vector<8x4xf32>
    %c0_5 = arith.constant 0 : index
    %c0_6 = arith.constant 0 : index
    %c0_7 = arith.constant 0 : index
    %6 = vector.load %arg4[%c0_5, %c0_6, %c0_7] : memref<1x1x4xf32, #tpu.memory_space<vmem>>, vector<1x1x4xf32>
    %7 = vector.shape_cast %6 : vector<1x1x4xf32> to vector<1x4xf32>
    %8 = vector.broadcast %7 : vector<1x4xf32> to vector<8x4xf32>
    %9 = arith.subf %5, %8 : vector<8x4xf32>
    %c0_8 = arith.constant 0 : index
    %c0_9 = arith.constant 0 : index
    %c0_10 = arith.constant 0 : index
    %10 = vector.load %arg5[%c0_8, %c0_9, %c0_10] : memref<1x8x4xf32, #tpu.memory_space<vmem>>, vector<1x8x4xf32>
    %11 = vector.shape_cast %10 : vector<1x8x4xf32> to vector<8x4xf32>
    %12 = vector.shape_cast %9 : vector<8x4xf32> to vector<1x8x4xf32>
    tpu.vector_store %arg5[%c0_8, %c0_9, %c0_10], %12 {strides = array<i32>} : memref<1x8x4xf32, #tpu.memory_space<vmem>>, vector<1x8x4xf32>,
    return
  }
  func.func @transform_0(%arg0: i32, %arg1: i32) -> (i32, i32, i32) {
    %c0_i32 = arith.constant 0 : i32
    %c0_i32_0 = arith.constant 0 : i32
    return %arg0, %arg1, %c0_i32 : i32, i32, i32
  }
  func.func @transform_1(%arg0: i32, %arg1: i32) -> (i32, i32, i32) {
    %c0_i32 = arith.constant 0 : i32
    %c0_i32_0 = arith.constant 0 : i32
    %c0_i32_1 = arith.constant 0 : i32
    return %arg0, %c0_i32, %c0_i32_0 : i32, i32, i32
  }
  func.func @transform_2(%arg0: i32, %arg1: i32) -> (i32, i32, i32) {
    %c0_i32 = arith.constant 0 : i32
    %c0_i32_0 = arith.constant 0 : i32
    %c0_i32_1 = arith.constant 0 : i32
    return %arg0, %c0_i32, %c0_i32_0 : i32, i32, i32
  }
  func.func @transform_3(%arg0: i32, %arg1: i32) -> (i32, i32, i32) {
    %c0_i32 = arith.constant 0 : i32
    %c0_i32_0 = arith.constant 0 : i32
    return %arg0, %arg1, %c0_i32 : i32, i32, i32
  }
}

</mosaic_0001>

<bundles_post_ra>
// kernel: pca_transform.1
= control target key start
LH: loop header
LB: loop body
LE: loop exit
PB: predicated region body
PF: predicated region fallthrough
CT: control target
= control target key end

     0   :  { %s525_s12 = smov 0   ;;  %s527_s13 = smov 0   ;;  %s564_s0 = inlined_call_operand.vmem [shape: f32[2,8,32], index: 0, kind: input, shape index: {}]   ;;  %s565_s1 = inlined_call_operand.vmem [shape: f32[2,32,128], index: 1, kind: input, shape index: {}]   ;;  %s566_s2 = inlined_call_operand.vmem [shape: f32[2,1,4], index: 2, kind: input, shape index: {}]   ;;  %s567_s3 = inlined_call_operand.vmem [shape: f32[2,8,4], index: 3, kind: output, shape index: {}]  }
   0x1   :  { %s529_s14 = smov 0  }
   0x2 LB: > { %s25_s15 = sadd.s32 1, %s496_s13  ;;  %p419_p0 = scmp.ge.s32.totalorder %s500_s14, 1  ;;  %s500_s14 = sphi %s529_s14, %s13_s14   ;;  %s496_s13 = sphi %s527_s13, %s569_s13   ;;  %s492_s12 = sphi %s525_s12, %s568_s12  }
   0x3   : > { %p27_p1 = scmp.ge.s32.totalorder %s25_s15, 2  ;;  %p173_p2 = scmp.lt.s32.totalorder %s500_s14, 3 }
   0x5   : > { %s571_s15 = smov (%p27_p1, %s25_s15), 0  ;;  %p174_p3 = pnand %p419_p0, %p173_p2 }
   0x6   : > { %p209_p4 = scmp.lt.s32.totalorder (!%p174_p3), %s492_s12, 1  ;;  %v502_v0 = vmov (!%p174_p3), 0.0|0.0   ;;  %vm503_vm0 = vmmov (!%p174_p3), 0   ;;  %v504_v1 = vmov (!%p174_p3), 0.0   ;;  %vm236_vm1 = vcmask (!%p174_p3), 261120  }
   0x7   : > { %177 = sbr.rel (%p174_p3) target bundleno = 242 (0xf2), region = 32  ;;  %445 = vmatprep.subr.bf16.mxu0 (!%p174_p3), %v502_v0  ;;  %442 = vmatprep.mubr.msk.f32.mxu0 (!%p174_p3), %vm503_vm0, %v504_v1  ;;  %vm318_vm2 = vcmask (!%p174_p3), 31744  }
   0xe   : > { %s573_s12 = smov (!%p209_p4, %s492_s12), 1 }
   0xf   : > { %s428_s16 = sshll.u32 %s573_s12, 5  ;;  %s420_s20 = sshll.u32 %s573_s12, 3 }
  0x10   : > { %s220_s19 = scalar_lea.vmem %s565_s1, %s428_s16  ;;  %s215_s23 = scalar_lea.vmem %s564_s0, %s420_s20 }
  0x11   : > { %v232_v2 = vld [vmem:[%s220_s19] sm:$0xff]  ;;  %v233_v3 = vld [vmem:[%s220_s19 + $0x8] sm:$0xff]  ;;  %v234_v4 = vld [vmem:[%s220_s19 + $0x10] sm:$0xff]  ;;  %s223_s26 = scalar_lea.vmem %s566_s2, %s573_s12  ;;  %s230_s29 = scalar_lea.vmem %s567_s3, %s420_s20 }
  0x12   : > { %v446_v5 = vpack.c.bf16 %v233_v3, %v232_v2  ;;  %v235_v6 = vld [vmem:[%s220_s19 + $0x18] sm:$0xff]  ;;  %v231_v8 = vld [vmem:[%s215_s23] sm:$0xff] }
  0x13   : > { %v449_v7 = vpack.c.bf16 %v235_v6, %v234_v4  ;;  %v425_v9 = vld [vmem:[%s223_s26] ss:$0 sm:$0xff] }
  0x14   : > { %447 = vmatpush3.bf16.msra.mxu0 %v446_v5 }
  0x15   : > { %448 = vmatprep.subr.bf16.mxu0 %v502_v0 }
  0x18   : > { %450 = vmatpush3.bf16.msra.mxu0 %v449_v7 }
  0x1b   : > { %443 = vmatmul.mubr.msk.f32.vlgmr.msra.gmra.mrb[0].mxu0 %vm236_vm1, %v231_v8 }
  0xee   : > { %v306_v10 = vpop.f32.mrb[0].mxu0 }
  0xef   : > { %v317_v11 = vsub.f32 %v306_v10, %v425_v9  ;;  %v444_v12 = vpop.f32.mrb[1].mxu0 }
  0xf1   : > { %319 = vst.msk [vmem:[%s230_s29] sm:$0xff] %vm318_vm2, %v317_v11 }
  0xf2 PF: > { %s13_s14 = sadd.s32 1, %s500_s14   ;;  %s568_s12 = smov %s496_s13 }
  0xf3   : > { %p10_p5 = scmp.ge.s32.totalorder %s13_s14, 4   ;;  %s569_s13 = smov %s571_s15 }
  0xf5   :  { %12 = sbr.rel (!%p10_p5) target bundleno = 2 (0x2), region = 68 }

</bundles_post_ra>
